<compile_context>
chip_gen: v5e
topology: v5e:2x2
jax: 0.10.0
libtpu: 0.0.40
codegen_flags: <defaults>
</compile_context>

<pallas_src>
import jax
import jax.numpy as jnp
from jax.experimental import pallas as pl
from jax.experimental.pallas import tpu as pltpu


HIDDEN = 100        # fixed by the module definition
HIDDEN_PAD = 128    # padded hidden width (multiple of 128 lanes)
LANE = 128


def _round_up(n, m):
    return ((n + m - 1) // m) * m


def mlp_logsoftmax_kernel(x_ref, w1_ref, b1_ref, w2_ref, b2_ref, o_ref):
    """Fused: (x @ W1 + b1) -> sigmoid -> (@ W2 + b2) -> log_softmax over axis 1.

    x_ref/w1_ref/w2_ref are bf16 (MXU inputs); biases and all math after the
    matmuls are f32. Padded hidden lanes are exact zeros through W2; padded
    output lanes carry a -1e30 bias so they contribute nothing to log_softmax.
    """
    # Layer 1: bf16 matmul, f32 accumulate, sigmoid in f32 (EUP).
    h = jnp.dot(x_ref[...], w1_ref[...], preferred_element_type=jnp.float32)
    h = jax.nn.sigmoid(h + b1_ref[...])

    # Layer 2: cast activations to bf16 for the MXU, accumulate in f32.
    z = jnp.dot(h.astype(jnp.bfloat16), w2_ref[...],
                preferred_element_type=jnp.float32)
    z = z + b2_ref[...]

    # Numerically stable log_softmax along dim=1 (padded lanes are ~-1e30).
    z_max = jnp.max(z, axis=1, keepdims=True)
    z_shift = z - z_max
    lse = jnp.log(jnp.sum(jnp.exp(z_shift), axis=1, keepdims=True))
    o_ref[...] = (z_shift - lse).astype(o_ref.dtype)


def net_forward(x, w1, b1, w2, b2, *, batch_tile=256):
    """x: (B, input_size) f32. w1: (in,100), b1: (1,100), w2: (100,out), b2: (1,out).

    Returns (B, output_size) f32 log-probabilities (log_softmax over dim=1).
    """
    B, in_size = x.shape
    out_size = w2.shape[1]

    # --- pad HIDDEN 100 -> 128 (zeros; bit-exact through zero W2 rows) ---
    hpad = HIDDEN_PAD - HIDDEN
    w1p = jnp.pad(w1, ((0, 0), (0, hpad)))
    b1p = jnp.pad(b1, ((0, 0), (0, hpad)))
    w2p = jnp.pad(w2, ((0, hpad), (0, 0)))

    # --- pad output width to a multiple of 128 lanes (lane-dense stores) ---
    out_pad = _round_up(out_size, LANE)
    opad = out_pad - out_size
    w2p = jnp.pad(w2p, ((0, 0), (0, opad)))
    b2p = jnp.pad(b2, ((0, 0), (0, opad)), constant_values=-1e30)

    # --- batch tiling ---
    if B >= batch_tile:
        TB = batch_tile                 # 256-row tiles: fills the MXU, tiny VMEM footprint
    else:
        TB = _round_up(B, 8)            # small batch: one full-dim block
    Bp = _round_up(B, TB)
    xp = jnp.pad(x, ((0, Bp - B), (0, 0)))

    # --- bf16 MXU inputs (halves HBM bytes for x/W; f32 accumulate in-kernel) ---
    xb = xp.astype(jnp.bfloat16)
    w1b = w1p.astype(jnp.bfloat16)
    w2b = w2p.astype(jnp.bfloat16)

    grid = (Bp // TB,)

    flops = 2 * Bp * (in_size * HIDDEN_PAD + HIDDEN_PAD * out_pad)
    bytes_accessed = (xb.size * 2 + w1b.size * 2 + w2b.size * 2
                      + b1p.size * 4 + b2p.size * 4 + Bp * out_pad * 4)
    cost = pl.CostEstimate(flops=flops,
                           transcendentals=Bp * (HIDDEN_PAD + out_pad),
                           bytes_accessed=bytes_accessed)

    out_padded = pl.pallas_call(
        mlp_logsoftmax_kernel,
        out_shape=jax.ShapeDtypeStruct((Bp, out_pad), jnp.float32),
        grid_spec=pl.GridSpec(
            grid=grid,
            in_specs=[
                pl.BlockSpec((TB, in_size), lambda i: (i, 0)),      # x tile (pipelined)
                pl.BlockSpec(w1b.shape, lambda i: (0, 0)),          # weights stay resident
                pl.BlockSpec(b1p.shape, lambda i: (0, 0)),
                pl.BlockSpec(w2b.shape, lambda i: (0, 0)),
                pl.BlockSpec(b2p.shape, lambda i: (0, 0)),
            ],
            out_specs=pl.BlockSpec((TB, out_pad), lambda i: (i, 0)),
        ),
        compiler_params=pltpu.CompilerParams(
            dimension_semantics=("parallel",),   # batch tiles independent -> 2-TC shard on v7x
        ),
        cost_estimate=cost,
    )(xb, w1b, b1p, w2b, b2p)

    # Slice away batch padding and the padded logit lanes.
    return out_padded[:B, :out_size]


def init_params(key, input_size, output_size):
    """Deterministic PyTorch-style uniform(-1/sqrt(fan_in), 1/sqrt(fan_in)) init.

    Weights stored as (in_features, out_features) so the kernel does x @ W.
    """
    k1, k2, k3, k4 = jax.random.split(key, 4)
    bound1 = 1.0 / jnp.sqrt(jnp.float32(input_size))
    bound2 = 1.0 / jnp.sqrt(jnp.float32(HIDDEN))
    w1 = jax.random.uniform(k1, (input_size, HIDDEN), jnp.float32, -bound1, bound1)
    b1 = jax.random.uniform(k2, (1, HIDDEN), jnp.float32, -bound1, bound1)
    w2 = jax.random.uniform(k3, (HIDDEN, output_size), jnp.float32, -bound2, bound2)
    b2 = jax.random.uniform(k4, (1, output_size), jnp.float32, -bound2, bound2)
    return w1, b1, w2, b2


if __name__ == "__main__":
    key = jax.random.PRNGKey(0)
    input_size, output_size, batch = 32, 16, 8

    k_x, k_p = jax.random.split(key)
    x = jax.random.normal(k_x, (batch, input_size), jnp.float32)
    w1, b1, w2, b2 = init_params(k_p, input_size, output_size)

    out = net_forward(x, w1, b1, w2, b2)
    jax.block_until_ready(out)

    # Reference check in plain JAX (f32); kernel uses bf16 MXU inputs, so allow
    # a bf16-scale tolerance.
    h_ref = jax.nn.sigmoid(x @ w1 + b1)
    z_ref = h_ref @ w2 + b2
    ref = jax.nn.log_softmax(z_ref, axis=1)
    assert out.shape == (batch, output_size), f"bad shape {out.shape}"
    assert jnp.allclose(out, ref, atol=2e-2, rtol=2e-2), "mismatch vs reference"
    # log_softmax rows should exp-sum to 1
    assert jnp.allclose(jnp.sum(jnp.exp(out), axis=1), 1.0, atol=1e-3)

    print("KERNEL_OK")
</pallas_src>

<mosaic_0001>
module attributes {stable_mosaic.version = 11 : i64} {
  func.func @mlp_logsoftmax_kernel(%arg0: i32, %arg1: memref<8x32xbf16, #tpu.memory_space<vmem>>, %arg2: memref<32x128xbf16, #tpu.memory_space<vmem>>, %arg3: memref<1x128xf32, #tpu.memory_space<vmem>>, %arg4: memref<128x128xbf16, #tpu.memory_space<vmem>>, %arg5: memref<1x128xf32, #tpu.memory_space<vmem>>, %arg6: memref<8x128xf32, #tpu.memory_space<vmem>>) attributes {dimension_semantics = [#tpu.dimension_semantics<parallel>], iteration_bounds = array<i64: 1>, scalar_prefetch = 0 : i64, scratch_operands = 0 : i64, tpu.core_type = #tpu.core_type<tc>, window_params = [{transform_indices = @transform_0, window_bounds = array<i64: 8, 32>}, {pipeline_mode = #tpu.pipeline_mode<synchronous>, transform_indices = @transform_1, window_bounds = array<i64: 32, 128>}, {pipeline_mode = #tpu.pipeline_mode<synchronous>, transform_indices = @transform_2, window_bounds = array<i64: 1, 128>}, {pipeline_mode = #tpu.pipeline_mode<synchronous>, transform_indices = @transform_3, window_bounds = array<i64: 128, 128>}, {pipeline_mode = #tpu.pipeline_mode<synchronous>, transform_indices = @transform_4, window_bounds = array<i64: 1, 128>}, {transform_indices = @transform_5, window_bounds = array<i64: 8, 128>}]} {
    %c0 = arith.constant 0 : index
    %c0_0 = arith.constant 0 : index
    %0 = vector.load %arg1[%c0, %c0_0] : memref<8x32xbf16, #tpu.memory_space<vmem>>, vector<8x32xbf16>
    %c0_1 = arith.constant 0 : index
    %c0_2 = arith.constant 0 : index
    %1 = vector.load %arg2[%c0_1, %c0_2] : memref<32x128xbf16, #tpu.memory_space<vmem>>, vector<32x128xbf16>
    %cst = arith.constant dense<0.000000e+00> : vector<8x128xf32>
    %2 = tpu.matmul %0, %1, %cst {dimension_numbers = #tpu.dot_dimension_numbers<[1], [0], [0], [1], [0, 0, 1, 1], [], []>} : vector<8x32xbf16>, vector<32x128xbf16>, vector<8x128xf32> -> vector<8x128xf32>
    %c0_3 = arith.constant 0 : index
    %c0_4 = arith.constant 0 : index
    %3 = vector.load %arg3[%c0_3, %c0_4] : memref<1x128xf32, #tpu.memory_space<vmem>>, vector<1x128xf32>
    %4 = vector.broadcast %3 : vector<1x128xf32> to vector<8x128xf32>
    %5 = arith.addf %2, %4 : vector<8x128xf32>
    %6 = arith.negf %5 : vector<8x128xf32>
    %7 = math.exp %6 : vector<8x128xf32>
    %cst_5 = arith.constant 1.000000e+00 : f32
    %8 = vector.broadcast %cst_5 : f32 to vector<8x128xf32>
    %9 = arith.addf %8, %7 : vector<8x128xf32>
    %10 = arith.divf %8, %9 : vector<8x128xf32>
    %11 = arith.truncf %10 : vector<8x128xf32> to vector<8x128xbf16>
    %c0_6 = arith.constant 0 : index
    %c0_7 = arith.constant 0 : index
    %12 = vector.load %arg4[%c0_6, %c0_7] : memref<128x128xbf16, #tpu.memory_space<vmem>>, vector<128x128xbf16>
    %cst_8 = arith.constant dense<0.000000e+00> : vector<8x128xf32>
    %13 = tpu.matmul %11, %12, %cst_8 {dimension_numbers = #tpu.dot_dimension_numbers<[1], [0], [0], [1], [0, 0, 1, 1], [], []>} : vector<8x128xbf16>, vector<128x128xbf16>, vector<8x128xf32> -> vector<8x128xf32>
    %c0_9 = arith.constant 0 : index
    %c0_10 = arith.constant 0 : index
    %14 = vector.load %arg5[%c0_9, %c0_10] : memref<1x128xf32, #tpu.memory_space<vmem>>, vector<1x128xf32>
    %15 = vector.broadcast %14 : vector<1x128xf32> to vector<8x128xf32>
    %16 = arith.addf %13, %15 : vector<8x128xf32>
    %cst_11 = arith.constant dense<0xFF800000> : vector<8xf32>
    %17 = vector.multi_reduction <maximumf>, %16, %cst_11 [1] : vector<8x128xf32> to vector<8xf32>
    %18 = vector.shape_cast %17 : vector<8xf32> to vector<8x1xf32>
    %19 = vector.broadcast %18 : vector<8x1xf32> to vector<8x128xf32>
    %20 = arith.subf %16, %19 : vector<8x128xf32>
    %21 = math.exp %20 : vector<8x128xf32>
    %cst_12 = arith.constant dense<0.000000e+00> : vector<8xf32>
    %22 = vector.multi_reduction <add>, %21, %cst_12 [1] : vector<8x128xf32> to vector<8xf32>
    %23 = vector.shape_cast %22 : vector<8xf32> to vector<8x1xf32>
    %24 = math.log %23 : vector<8x1xf32>
    %25 = vector.broadcast %24 : vector<8x1xf32> to vector<8x128xf32>
    %26 = arith.subf %20, %25 : vector<8x128xf32>
    %c0_13 = arith.constant 0 : index
    %c0_14 = arith.constant 0 : index
    %27 = vector.load %arg6[%c0_13, %c0_14] : memref<8x128xf32, #tpu.memory_space<vmem>>, vector<8x128xf32>
    tpu.vector_store %arg6[%c0_13, %c0_14], %26 {strides = array<i32>} : memref<8x128xf32, #tpu.memory_space<vmem>>, vector<8x128xf32>,
    return
  }
  func.func @transform_0(%arg0: i32) -> (i32, i32) {
    %c0_i32 = arith.constant 0 : i32
    %c0_i32_0 = arith.constant 0 : i32
    return %arg0, %c0_i32 : i32, i32
  }
  func.func @transform_1(%arg0: i32) -> (i32, i32) {
    %c0_i32 = arith.constant 0 : i32
    %c0_i32_0 = arith.constant 0 : i32
    %c0_i32_1 = arith.constant 0 : i32
    return %c0_i32, %c0_i32_0 : i32, i32
  }
  func.func @transform_2(%arg0: i32) -> (i32, i32) {
    %c0_i32 = arith.constant 0 : i32
    %c0_i32_0 = arith.constant 0 : i32
    %c0_i32_1 = arith.constant 0 : i32
    return %c0_i32, %c0_i32_0 : i32, i32
  }
  func.func @transform_3(%arg0: i32) -> (i32, i32) {
    %c0_i32 = arith.constant 0 : i32
    %c0_i32_0 = arith.constant 0 : i32
    %c0_i32_1 = arith.constant 0 : i32
    return %c0_i32, %c0_i32_0 : i32, i32
  }
  func.func @transform_4(%arg0: i32) -> (i32, i32) {
    %c0_i32 = arith.constant 0 : i32
    %c0_i32_0 = arith.constant 0 : i32
    %c0_i32_1 = arith.constant 0 : i32
    return %c0_i32, %c0_i32_0 : i32, i32
  }
  func.func @transform_5(%arg0: i32) -> (i32, i32) {
    %c0_i32 = arith.constant 0 : i32
    %c0_i32_0 = arith.constant 0 : i32
    return %arg0, %c0_i32 : i32, i32
  }
}

</mosaic_0001>

<bundles_post_ra>
// kernel: tpu_custom_call.1
= control target key start
LH: loop header
LB: loop body
LE: loop exit
PB: predicated region body
PF: predicated region fallthrough
CT: control target
= control target key end

     0   :  { %10 = vsyncpa [#allocation3], 0  ;;  %s459_s0 = inlined_call_operand.hbm [shape: bf16[8,32], index: 0, kind: input, shape index: {}]   ;;  %s460_s1 = inlined_call_operand.hbm [shape: bf16[32,128], index: 1, kind: input, shape index: {}]   ;;  %s461_s2 = inlined_call_operand.vmem [shape: f32[1,128], index: 2, kind: input, shape index: {}]   ;;  %s462_s3 = inlined_call_operand.hbm [shape: bf16[128,128], index: 3, kind: input, shape index: {}]   ;;  %s463_s4 = inlined_call_operand.vmem [shape: f32[1,128], index: 4, kind: input, shape index: {}]   ;;  %s464_s5 = inlined_call_operand.hbm [shape: f32[8,128], index: 5, kind: output, shape index: {}]  }
   0x1   :  { %11 = vsyncpa [#allocation6], 0  ;;  %s28_s20 = sshll.u32 %s460_s1, 4  ;;  %s29_s20 = int_to_ptr.hbm [resolvable:$true] %s28_s20 }
   0x2   :  { %12 = vsyncpa [#allocation4], 0  ;;  %s405_s21 = smov [#allocation5]   ;;  %s18_s25 = sshll.u32 %s459_s0, 4  ;;  %s19_s25 = int_to_ptr.hbm [resolvable:$true] %s18_s25 }
   0x3   :  { %s30_s22 = sshll.u32 %s405_s21, 4  ;;  %s406_s26 = smov 64   ;;  %s31_s22 = int_to_ptr.vmem [resolvable:$true] %s30_s22 }
   0x4   :  { %s407_s27 = smov 4   ;;  %s408_s28 = smov [#allocation2]  }
   0x5   :  { %36 = dma.hbm_to_vmem [thread:$0]  %s29_s20, 256, %s31_s22, [#allocation6], %s406_s26, %s406_s26, %s407_s27  }
   0x6   :  { %s20_s29 = sshll.u32 %s408_s28, 4  ;;  %s43_s7 = sshll.u32 %s462_s3, 4  ;;  %s21_s29 = int_to_ptr.vmem [resolvable:$true] %s20_s29  ;;  %s44_s7 = int_to_ptr.hbm [resolvable:$true] %s43_s7 }
   0x7   :  { %23 = dma.hbm_to_vmem [thread:$0]  %s19_s25, 64, %s21_s29, [#allocation3]  }
   0x8   :  { %s409_s1 = smov [#allocation7]  }
   0x9   :  { %s45_s8 = sshll.u32 %s409_s1, 4  ;;  %s46_s8 = int_to_ptr.vmem [resolvable:$true] %s45_s8 }
   0xa   :  { %51 = dma.hbm_to_vmem [thread:$0]  %s44_s7, 1024, %s46_s8, [#allocation6], %s406_s26, %s406_s26, %s407_s27  }
   0xb   :  { %399 = dma.done.wait [#allocation3], 64  }
   0xc   :  { %400 = vsyncadd [#allocation3], 4294967232 }
   0xd   :  { %401 = dma.done.wait [#allocation6], 1280  }
   0xe   :  { %402 = vsyncadd [#allocation6], 4294966016  ;;  %v278_v0 = vld [vmem:[#allocation5 + $0x8] sm:$0xff]  ;;  %v277_v1 = vld [vmem:[#allocation5] sm:$0xff]  ;;  %vm88_vm0 = vcmask 261120   ;;  %s410_s10 = smov [#allocation8]  }
   0xf   :  { %98 = vmatpush.bf16.msra.mxu0 %v278_v0  ;;  %v67_v2 = vld [vmem:[#allocation2] sm:$0xf]  ;;  %v286_v3 = vld [vmem:[#allocation7 + $0x38] sm:$0xff]  ;;  %v285_v4 = vld [vmem:[#allocation7 + $0x30] sm:$0xff]  ;;  %s222_s11 = sshll.u32 %s410_s10, 4  ;;  %s224_s14 = sshll.u32 %s464_s5, 4  ;;  %s223_s11 = int_to_ptr.vmem [resolvable:$true] %s222_s11  ;;  %s225_s14 = int_to_ptr.hbm [resolvable:$true] %s224_s14 }
  0x10   :  { %193 = vmatpush.bf16.msra.mxu1 %v286_v3  ;;  %v284_v5 = vld [vmem:[#allocation7 + $0x28] sm:$0xff]  ;;  %v283_v6 = vld [vmem:[#allocation7 + $0x20] sm:$0xff]  ;;  %v282_v7 = vld [vmem:[#allocation7 + $0x18] sm:$0xff] }
  0x11   :  { %v281_v8 = vld [vmem:[#allocation7 + $0x10] sm:$0xff]  ;;  %v280_v9 = vld [vmem:[#allocation7 + $0x8] sm:$0xff]  ;;  %v279_v10 = vld [vmem:[#allocation7] sm:$0xff] }
  0x12   :  { %v293_v11 = vld [vmem:[%s461_s2] ss:$0 sm:$0xff] }
  0x13   :  { %99 = vmatpush.bf16.msra.mxu0 %v277_v1  ;;  %v294_v29 = vld [vmem:[%s463_s4] ss:$0 sm:$0xff] }
  0x14   :  { %194 = vmatpush.bf16.msra.mxu1 %v285_v4 }
  0x16   :  { %243 = vmatmul.msk.bf16.vlgmr.msra.gmra.mxu0 %vm88_vm0, %v67_v2 }
  0x18   :  { %195 = vmatpush.bf16.msra.mxu1 %v284_v5 }
  0x1c   :  { %196 = vmatpush.bf16.msra.mxu1 %v283_v6 }
  0x20   :  { %197 = vmatpush.bf16.msra.mxu1 %v282_v7 }
  0x24   :  { %198 = vmatpush.bf16.msra.mxu1 %v281_v8 }
  0x28   :  { %199 = vmatpush.bf16.msra.mxu1 %v280_v9 }
  0x2c   :  { %200 = vmatpush.bf16.msra.mxu1 %v279_v10 }
  0x93   :  { %v101_v12 = vpop.f32.mrf.mxu0 }
  0x94   :  { %v102_v13 = vadd.f32 %v293_v11, %v101_v12 }
  0x96   :  { %v244_v14 = vmul.f32 -1.442695, %v102_v13 }
  0x98   :  { %295 = vpow2.f32 %v244_v14 }
  0x9b   :  { %v103_v15 = vpop.f32.mrf.mxu0 }
  0x9e   :  { %v296_v16 = vpop.eup %295 }
  0x9f   :  { %v108_v17 = vadd.f32 1.0, %v296_v16 }
  0xa1   :  { %297 = vrcp.f32 %v108_v17  ;;  %v120_v21 = vand.u32 2147483648, %v108_v17  ;;  %v118_v23 = vand.u32 2147483647, %v108_v17  ;;  %vm114_vm2 = vweird.f32 %v108_v17 }
  0xa3   :  { %v121_v25 = vor.u32 1.1754944e-38, %v120_v21  ;;  %vm119_vm4 = vcmp.eq.f32.partialorder %v118_v23, 8.507059e+37 }
  0xa7   :  { %v298_v18 = vpop.eup %297 }
  0xa8   :  { %v110_v19 = vmul.f32 %v298_v18, %v108_v17  ;;  %vm115_vm1 = vweird.f32 %v298_v18 }
  0xa9   :  { %vm116_vm3 = vmor %vm114_vm2, %vm115_vm1 }
  0xaa   :  { %v111_v20 = vsub.f32 1.0, %v110_v19 }
  0xac   :  { %v112_v22 = vmul.f32 %v298_v18, %v111_v20 }
  0xae   :  { %v113_v24 = vadd.f32 %v298_v18, %v112_v22 }
  0xb0   :  { %v117_v26 = vsel %vm116_vm3, %v298_v18, %v113_v24 }
  0xb1   :  { %v122_v27 = vsel %vm119_vm4, %v121_v25, %v117_v26 }
  0xb2   :  { %v124_v28 = vpack.c.bf16 %v122_v27, %v122_v27 }
  0xb4   :  { %201 = vmatmul.bf16.vlgmr.msra.gmra.mxu1 %v124_v28 }
 0x131   :  { %v202_v30 = vpop.f32.mrf.mxu1 }
 0x132   :  { %v203_v31 = vadd.f32 %v294_v29, %v202_v30 }
 0x134   :  { %206 = vmax.xlane.f32.xlu0 %v203_v31 }
 0x139   :  { %v204_v32 = vpop.f32.mrf.mxu1 }
 0x1a7   :  { %v207_v33 = vpop.xlane.xlu0 %206 }
 0x1a8   :  { %v208_v34 = vsub.f32 %v203_v31, %v207_v33 }
 0x1aa   :  { %v209_v35 = vmul.f32 1.442695, %v208_v34 }
 0x1ac   :  { %299 = vpow2.f32 %v209_v35 }
 0x1b2   :  { %v300_v36 = vpop.eup %299 }
 0x1b3   :  { %211 = vadd.xlane.f32.xlu0 %v300_v36 }
 0x226   :  { %v212_v37 = vpop.xlane.xlu0 %211 }
 0x227   :  { %301 = vlog2.f32 %v212_v37 }
 0x22d   :  { %v302_v38 = vpop.eup %301 }
 0x22e   :  { %v214_v39 = vmul.f32 0.6931472, %v302_v38 }
 0x230   :  { %v215_v40 = vsub.f32 %v208_v34, %v214_v39 }
 0x232   :  { %216 = vst [vmem:[#allocation8] sm:$0xff] %v215_v40 }
 0x233   :  { %227 = dma.vmem_to_hbm [thread:$0]  %s223_s11, 128, %s225_s14, [#allocation4]  }
 0x234   :  { %403 = dma.done.wait [#allocation4], 128  }
 0x235   :  { %404 = vsyncadd [#allocation4], 4294967168 }
 0x236   :  { %232 = vsyncpa [#allocation3], 1 }
 0x237   :  { %233 = vsyncpa [#allocation6], 1 }
 0x238   :  { %234 = vsyncpa [#allocation4], 1 }

</bundles_post_ra>
